<compile_context>
chip_gen: v7x
topology: tpu7x:2x2x1
jax: 0.10.0
libtpu: 0.0.40
codegen_flags: <defaults>
</compile_context>

<pallas_src>
import functools

import numpy as np
import jax
import jax.numpy as jnp
from jax.experimental import pallas as pl
from jax.experimental.pallas import tpu as pltpu


_PAD_MODE = {
    "constant": "constant",
    "reflect": "reflect",
    "replicate": "edge",
    "circular": "wrap",
}


def _round_up(x, m):
    return ((x + m - 1) // m) * m


# ----------------------------------------------------------------------------
# Host-side (numpy) motion-kernel construction: rotated, normalized line kernel
# (kornia get_motion_kernel2d, mode='nearest').
# ----------------------------------------------------------------------------
def get_motion_kernel2d(kernel_size, angle, direction, mode: str = "nearest"):
    if not isinstance(kernel_size, int) or kernel_size % 2 == 0 or kernel_size < 3:
        raise ValueError("kernel_size must be an odd integer >= 3")
    if mode != "nearest":
        # TODO(synk): bilinear kernel-rotation mode not implemented
        # (the module default is 'nearest').
        raise NotImplementedError("only mode='nearest' is supported")

    ks = kernel_size
    d = (min(max(float(direction), -1.0), 1.0) + 1.0) / 2.0
    idx = np.arange(ks, dtype=np.float64)
    row = d + ((1.0 - 2.0 * d) / (ks - 1)) * idx

    kern = np.zeros((ks, ks), np.float64)
    kern[ks // 2, :] = row

    # Rotate counter-clockwise by `angle` degrees about the kernel center,
    # nearest interpolation, zeros outside (matches kornia rotate, nearest).
    # TODO(synk): validate the rotation sign convention against
    # kornia.get_motion_kernel2d for a grid of angles.
    cx = cy = (ks - 1) / 2.0
    a = np.deg2rad(float(angle))
    cosA, sinA = np.cos(a), np.sin(a)
    ys, xs = np.meshgrid(np.arange(ks, dtype=np.float64),
                         np.arange(ks, dtype=np.float64), indexing="ij")
    dx, dy = xs - cx, ys - cy
    sx = cosA * dx - sinA * dy + cx          # inverse (dst -> src) mapping
    sy = sinA * dx + cosA * dy + cy
    sxi = np.rint(sx).astype(np.int64)
    syi = np.rint(sy).astype(np.int64)
    valid = (sxi >= 0) & (sxi < ks) & (syi >= 0) & (syi < ks)
    sxc = np.clip(sxi, 0, ks - 1)
    syc = np.clip(syi, 0, ks - 1)
    rot = np.where(valid, kern[syc, sxc], 0.0)
    rot = rot / rot.sum()                    # center tap is always 0.5 -> sum > 0
    return rot                               # [ks, ks] float64


def _nonzero_taps(kernel2d):
    """Extract the (row_offset, col_offset, weight) triples of nonzero taps."""
    ks = kernel2d.shape[-1]
    return tuple(
        (i, j, float(kernel2d[i, j]))
        for i in range(ks)
        for j in range(ks)
        if kernel2d[i, j] != 0.0
    )


# ----------------------------------------------------------------------------
# Pallas kernel body: depthwise 2-D cross-correlation over the nonzero taps.
# One batch image per grid step; all C channels processed together.
# ----------------------------------------------------------------------------
def _motion_blur_kernel(x_ref, out_ref, xpad_ref, *, taps, H, W, pad, border_type):
    # x_ref   : (C, H, W)     image block, native dtype
    # out_ref : (C, H, W)
    # xpad_ref: (C, Hp, WpL)  native-dtype padded scratch, lane-padded to 128
    C = x_ref.shape[0]
    Hp = H + 2 * pad
    Wp = W + 2 * pad
    WpL = xpad_ref.shape[-1]
    dt = xpad_ref.dtype

    # --- interior ------------------------------------------------------------
    # TODO(synk): DMA the HBM block straight into this window (pl.ANY input +
    # make_async_copy double-buffer) to drop this VMEM->VMEM copy entirely.
    xpad_ref[:, pad:pad + H, pad:pad + W] = x_ref[...]

    # --- halo strips (tiny vs interior: O(pad*(H+WpL)) elements) -------------
    if border_type == "constant":
        zc = jnp.zeros((C, H, pad), dt)
        xpad_ref[:, pad:pad + H, 0:pad] = zc
        xpad_ref[:, pad:pad + H, pad + W:Wp] = zc
        zr = jnp.zeros((C, pad, WpL), dt)
        xpad_ref[:, 0:pad, :] = zr
        xpad_ref[:, pad + H:Hp, :] = zr
    else:
        # Column halos from the image edges, then row halos from the already
        # column-extended rows (padding is separable => corners come out right).
        for c in range(pad):
            sl = {"replicate": 0, "reflect": pad - c, "circular": W - pad + c}[border_type]
            sr = {"replicate": W - 1, "reflect": W - 2 - c, "circular": c}[border_type]
            xpad_ref[:, pad:pad + H, c:c + 1] = x_ref[:, :, sl:sl + 1]
            rc = pad + W + c
            xpad_ref[:, pad:pad + H, rc:rc + 1] = x_ref[:, :, sr:sr + 1]
        for r in range(pad):
            st = {"replicate": 0, "reflect": pad - r, "circular": H - pad + r}[border_type]
            sb = {"replicate": H - 1, "reflect": H - 2 - r, "circular": r}[border_type]
            xpad_ref[:, r:r + 1, :] = xpad_ref[:, pad + st:pad + st + 1, :]
            br = pad + H + r
            xpad_ref[:, br:br + 1, :] = xpad_ref[:, pad + sb:pad + sb + 1, :]

    # --- sparse-tap accumulation in f32; two independent chains (VALU ILP) ---
    def window(di, dj):
        return xpad_ref[:, di:di + H, dj:dj + W].astype(jnp.float32)

    parts = []
    for phase in range(2):
        sub = taps[phase::2]
        if not sub:
            continue
        di0, dj0, w0 = sub[0]
        p = w0 * window(di0, dj0)
        for di, dj, w in sub[1:]:
            p = p + w * window(di, dj)
        parts.append(p)
    acc = parts[0]
    for p in parts[1:]:
        acc = acc + p

    # TODO(synk): integer image dtypes would need explicit rounding here.
    out_ref[...] = acc.astype(out_ref.dtype)


# ----------------------------------------------------------------------------
# pallas_call wrapper
# ----------------------------------------------------------------------------
def filter2d_pallas(image, taps, kernel_size, border_type: str = "constant"):
    """image: [B, C, H, W]; taps: static tuple of (di, dj, weight)."""
    if border_type not in _PAD_MODE:
        raise AssertionError(border_type)
    B, C, H, W = image.shape
    ks = int(kernel_size)
    pad = ks // 2
    if border_type == "reflect" and (pad >= H or pad >= W):
        raise ValueError("reflect padding requires kernel_size//2 < H and < W")
    Hp, Wp = H + 2 * pad, W + 2 * pad
    WpL = _round_up(Wp, 128)                 # lane-dense scratch rows

    itemsize = jnp.dtype(image.dtype).itemsize
    blk_bytes = C * H * W * itemsize
    scratch_bytes = C * Hp * WpL * itemsize
    # 2x double-buffered input block + 2x output block + scratch + slack.
    vmem_est = 4 * blk_bytes + scratch_bytes + (2 << 20)
    vmem_limit = int(min(64 << 20, max(32 << 20, vmem_est)))

    cost = pl.CostEstimate(
        flops=2 * len(taps) * B * C * H * W,
        transcendentals=0,
        bytes_accessed=2 * B * C * H * W * itemsize,
    )

    body = functools.partial(_motion_blur_kernel, taps=taps, H=H, W=W,
                             pad=pad, border_type=border_type)
    return pl.pallas_call(
        body,
        out_shape=jax.ShapeDtypeStruct((B, C, H, W), image.dtype),
        grid_spec=pltpu.PrefetchScalarGridSpec(
            num_scalar_prefetch=0,
            grid=(B,),
            in_specs=[pl.BlockSpec((None, C, H, W), lambda b: (b, 0, 0, 0))],
            out_specs=pl.BlockSpec((None, C, H, W), lambda b: (b, 0, 0, 0)),
            scratch_shapes=[pltpu.VMEM((C, Hp, WpL), image.dtype)],
        ),
        compiler_params=pltpu.CompilerParams(
            dimension_semantics=("parallel",),
            vmem_limit_bytes=vmem_limit,
        ),
        cost_estimate=cost,
    )(image)


# ----------------------------------------------------------------------------
# Functional + module-equivalent wrappers
# ----------------------------------------------------------------------------
def motion_blur(image, kernel_size, angle, direction,
                border_type: str = "constant", mode: str = "nearest"):
    if border_type not in _PAD_MODE:
        raise AssertionError(border_type)
    # TODO(synk): per-batch Tensor angle/direction (shape [B]) not supported;
    # only static scalar parameters are baked into the unrolled-tap kernel.
    kern = get_motion_kernel2d(int(kernel_size), float(angle), float(direction), mode)
    return filter2d_pallas(image, _nonzero_taps(kern), int(kernel_size), border_type)


class MotionBlur:
    def __init__(self, kernel_size: int, angle: float, direction: float,
                 border_type: str = "constant"):
        if border_type not in _PAD_MODE:
            raise AssertionError(border_type)
        self.kernel_size = int(kernel_size)
        self.angle = float(angle)
        self.direction = float(direction)
        self.border_type = border_type
        # Static params -> build the rotated line kernel once, host-side, and
        # keep only its nonzero taps.
        self._kernel2d = get_motion_kernel2d(self.kernel_size, self.angle, self.direction)
        self._taps = _nonzero_taps(self._kernel2d)

    def __repr__(self):
        return (f"{self.__class__.__name__}(kernel_size={self.kernel_size}, "
                f"angle={self.angle}, direction={self.direction}, "
                f"border_type={self.border_type})")

    def __call__(self, image):
        return filter2d_pallas(image, self._taps, self.kernel_size, self.border_type)


# ----------------------------------------------------------------------------
# Pure-JAX reference (for correctness checking only)
# ----------------------------------------------------------------------------
def _ref_filter2d(image, kernel2d, border_type="constant"):
    B, C, H, W = image.shape
    ks = kernel2d.shape[-1]
    pad = ks // 2
    xpad = jnp.pad(image.astype(jnp.float32),
                   ((0, 0), (0, 0), (pad, pad), (pad, pad)),
                   mode=_PAD_MODE[border_type])
    out = jnp.zeros((B, C, H, W), jnp.float32)
    for i in range(ks):
        for j in range(ks):
            out = out + kernel2d[i, j] * xpad[:, :, i:i + H, j:j + W]
    return out.astype(image.dtype)


if __name__ == "__main__":
    key = jax.random.PRNGKey(0)
    x = jax.random.uniform(key, (2, 4, 16, 16), dtype=jnp.float32)

    # Default (constant border) path: in-kernel zero halo strips, no HBM pad copy.
    mb = MotionBlur(kernel_size=5, angle=35.0, direction=0.5, border_type="constant")
    out = jax.block_until_ready(mb(x))
    ref = _ref_filter2d(x, jnp.asarray(mb._kernel2d, jnp.float32), "constant")
    assert out.shape == (2, 4, 16, 16)
    assert jnp.allclose(out, ref, atol=1e-5, rtol=1e-5), "mismatch (constant)"

    # Non-constant borders now also build their halos inside the kernel.
    for bt, ks, ang, dirn in [("replicate", 3, 90.0, 1.0),
                              ("reflect", 5, -30.0, -0.5),
                              ("circular", 3, 10.0, 0.0)]:
        mb2 = MotionBlur(kernel_size=ks, angle=ang, direction=dirn, border_type=bt)
        out2 = jax.block_until_ready(mb2(x))
        ref2 = _ref_filter2d(x, jnp.asarray(mb2._kernel2d, jnp.float32), bt)
        assert jnp.allclose(out2, ref2, atol=1e-5, rtol=1e-5), f"mismatch ({bt})"

    print("KERNEL_OK")
</pallas_src>

<mosaic_0001>
module attributes {stable_mosaic.version = 11 : i64} {
  func.func @_motion_blur_kernel(%arg0: i32, %arg1: memref<1x4x16x16xf32, #tpu.memory_space<vmem>>, %arg2: memref<1x4x16x16xf32, #tpu.memory_space<vmem>>, %arg3: memref<4x20x128xf32, #tpu.memory_space<vmem>>) attributes {dimension_semantics = [#tpu.dimension_semantics<parallel>], iteration_bounds = array<i64: 2>, scalar_prefetch = 0 : i64, scratch_operands = 1 : i64, tpu.core_type = #tpu.core_type<tc>, window_params = [{transform_indices = @transform_0, window_bounds = array<i64: 1, 4, 16, 16>}, {transform_indices = @transform_1, window_bounds = array<i64: 1, 4, 16, 16>}]} {
    %c0 = arith.constant 0 : index
    %c0_0 = arith.constant 0 : index
    %c0_1 = arith.constant 0 : index
    %c0_2 = arith.constant 0 : index
    %0 = vector.load %arg1[%c0, %c0_0, %c0_1, %c0_2] : memref<1x4x16x16xf32, #tpu.memory_space<vmem>>, vector<1x4x16x16xf32>
    %1 = vector.shape_cast %0 : vector<1x4x16x16xf32> to vector<4x16x16xf32>
    %c0_3 = arith.constant 0 : index
    %c2 = arith.constant 2 : index
    %c2_4 = arith.constant 2 : index
    %2 = vector.load %arg3[%c0_3, %c2, %c2_4] : memref<4x20x128xf32, #tpu.memory_space<vmem>>, vector<4x16x16xf32>
    tpu.vector_store %arg3[%c0_3, %c2, %c2_4], %1 {strides = array<i32>} : memref<4x20x128xf32, #tpu.memory_space<vmem>>, vector<4x16x16xf32>,
    %cst = arith.constant 0.000000e+00 : f32
    %3 = vector.broadcast %cst : f32 to vector<4x16x2xf32>
    %c0_5 = arith.constant 0 : index
    %c2_6 = arith.constant 2 : index
    %c0_7 = arith.constant 0 : index
    %4 = vector.load %arg3[%c0_5, %c2_6, %c0_7] : memref<4x20x128xf32, #tpu.memory_space<vmem>>, vector<4x16x2xf32>
    tpu.vector_store %arg3[%c0_5, %c2_6, %c0_7], %3 {strides = array<i32>} : memref<4x20x128xf32, #tpu.memory_space<vmem>>, vector<4x16x2xf32>,
    %c0_8 = arith.constant 0 : index
    %c2_9 = arith.constant 2 : index
    %c18 = arith.constant 18 : index
    %5 = vector.load %arg3[%c0_8, %c2_9, %c18] : memref<4x20x128xf32, #tpu.memory_space<vmem>>, vector<4x16x2xf32>
    tpu.vector_store %arg3[%c0_8, %c2_9, %c18], %3 {strides = array<i32>} : memref<4x20x128xf32, #tpu.memory_space<vmem>>, vector<4x16x2xf32>,
    %cst_10 = arith.constant 0.000000e+00 : f32
    %6 = vector.broadcast %cst_10 : f32 to vector<4x2x128xf32>
    %c0_11 = arith.constant 0 : index
    %c0_12 = arith.constant 0 : index
    %c0_13 = arith.constant 0 : index
    %7 = vector.load %arg3[%c0_11, %c0_12, %c0_13] : memref<4x20x128xf32, #tpu.memory_space<vmem>>, vector<4x2x128xf32>
    tpu.vector_store %arg3[%c0_11, %c0_12, %c0_13], %6 {strides = array<i32>} : memref<4x20x128xf32, #tpu.memory_space<vmem>>, vector<4x2x128xf32>,
    %c0_14 = arith.constant 0 : index
    %c18_15 = arith.constant 18 : index
    %c0_16 = arith.constant 0 : index
    %8 = vector.load %arg3[%c0_14, %c18_15, %c0_16] : memref<4x20x128xf32, #tpu.memory_space<vmem>>, vector<4x2x128xf32>
    tpu.vector_store %arg3[%c0_14, %c18_15, %c0_16], %6 {strides = array<i32>} : memref<4x20x128xf32, #tpu.memory_space<vmem>>, vector<4x2x128xf32>,
    %c0_17 = arith.constant 0 : index
    %c1 = arith.constant 1 : index
    %c3 = arith.constant 3 : index
    %9 = vector.load %arg3[%c0_17, %c1, %c3] : memref<4x20x128xf32, #tpu.memory_space<vmem>>, vector<4x16x16xf32>
    %cst_18 = arith.constant 1.500000e-01 : f32
    %10 = vector.broadcast %cst_18 : f32 to vector<4x16x16xf32>
    %11 = arith.mulf %10, %9 : vector<4x16x16xf32>
    %c0_19 = arith.constant 0 : index
    %c2_20 = arith.constant 2 : index
    %c2_21 = arith.constant 2 : index
    %12 = vector.load %arg3[%c0_19, %c2_20, %c2_21] : memref<4x20x128xf32, #tpu.memory_space<vmem>>, vector<4x16x16xf32>
    %cst_22 = arith.constant 2.000000e-01 : f32
    %13 = vector.broadcast %cst_22 : f32 to vector<4x16x16xf32>
    %14 = arith.mulf %13, %12 : vector<4x16x16xf32>
    %15 = arith.addf %11, %14 : vector<4x16x16xf32>
    %c0_23 = arith.constant 0 : index
    %c3_24 = arith.constant 3 : index
    %c1_25 = arith.constant 1 : index
    %16 = vector.load %arg3[%c0_23, %c3_24, %c1_25] : memref<4x20x128xf32, #tpu.memory_space<vmem>>, vector<4x16x16xf32>
    %cst_26 = arith.constant 2.500000e-01 : f32
    %17 = vector.broadcast %cst_26 : f32 to vector<4x16x16xf32>
    %18 = arith.mulf %17, %16 : vector<4x16x16xf32>
    %19 = arith.addf %15, %18 : vector<4x16x16xf32>
    %c0_27 = arith.constant 0 : index
    %c1_28 = arith.constant 1 : index
    %c4 = arith.constant 4 : index
    %20 = vector.load %arg3[%c0_27, %c1_28, %c4] : memref<4x20x128xf32, #tpu.memory_space<vmem>>, vector<4x16x16xf32>
    %cst_29 = arith.constant 1.000000e-01 : f32
    %21 = vector.broadcast %cst_29 : f32 to vector<4x16x16xf32>
    %22 = arith.mulf %21, %20 : vector<4x16x16xf32>
    %c0_30 = arith.constant 0 : index
    %c3_31 = arith.constant 3 : index
    %c0_32 = arith.constant 0 : index
    %23 = vector.load %arg3[%c0_30, %c3_31, %c0_32] : memref<4x20x128xf32, #tpu.memory_space<vmem>>, vector<4x16x16xf32>
    %cst_33 = arith.constant 3.000000e-01 : f32
    %24 = vector.broadcast %cst_33 : f32 to vector<4x16x16xf32>
    %25 = arith.mulf %24, %23 : vector<4x16x16xf32>
    %26 = arith.addf %22, %25 : vector<4x16x16xf32>
    %27 = arith.addf %19, %26 : vector<4x16x16xf32>
    %c0_34 = arith.constant 0 : index
    %c0_35 = arith.constant 0 : index
    %c0_36 = arith.constant 0 : index
    %c0_37 = arith.constant 0 : index
    %28 = vector.load %arg2[%c0_34, %c0_35, %c0_36, %c0_37] : memref<1x4x16x16xf32, #tpu.memory_space<vmem>>, vector<1x4x16x16xf32>
    %29 = vector.shape_cast %28 : vector<1x4x16x16xf32> to vector<4x16x16xf32>
    %30 = vector.shape_cast %27 : vector<4x16x16xf32> to vector<1x4x16x16xf32>
    tpu.vector_store %arg2[%c0_34, %c0_35, %c0_36, %c0_37], %30 {strides = array<i32>} : memref<1x4x16x16xf32, #tpu.memory_space<vmem>>, vector<1x4x16x16xf32>,
    return
  }
  func.func @transform_0(%arg0: i32) -> (i32, i32, i32, i32) {
    %c0_i32 = arith.constant 0 : i32
    %c0_i32_0 = arith.constant 0 : i32
    %c0_i32_1 = arith.constant 0 : i32
    %c0_i32_2 = arith.constant 0 : i32
    return %arg0, %c0_i32, %c0_i32_0, %c0_i32_1 : i32, i32, i32, i32
  }
  func.func @transform_1(%arg0: i32) -> (i32, i32, i32, i32) {
    %c0_i32 = arith.constant 0 : i32
    %c0_i32_0 = arith.constant 0 : i32
    %c0_i32_1 = arith.constant 0 : i32
    %c0_i32_2 = arith.constant 0 : i32
    return %arg0, %c0_i32, %c0_i32_0, %c0_i32_1 : i32, i32, i32, i32
  }
}

</mosaic_0001>

<bundles_post_ra>
// kernel: tpu_custom_call.1
= control target key start
LH: loop header
LB: loop body
LE: loop exit
PB: predicated region body
PF: predicated region fallthrough
CT: control target
= control target key end

     0   :  { %6 = vsyncpa [#allocation4], 0  ;;  %s992_s0 = inlined_call_operand.hbm [shape: f32[2,4,16,16], index: 0, kind: input, shape index: {}]   ;;  %s993_s1 = inlined_call_operand.hbm [shape: f32[2,4,16,16], index: 1, kind: output, shape index: {}]  }
   0x1   :  { %8 = vsyncpa [#allocation4 + $0x1], 0 }
   0x2   :  { %9 = vsyncpa [#allocation5], 0 }
   0x3   :  { %11 = vsyncpa [#allocation5 + $0x1], 0  ;;  %s754_s6 = smov 0   ;;  %s756_s7 = smov 0  }
   0x4   :  { %s758_s8 = smov 0   ;;  %s760_s9 = smov 0  }
   0x5 LB: > { %s775_s10 = sadd.s32 4294967295, %s730_s9   ;;  %s562_s11 = sadd.s32 4294967294, %s730_s9   ;;  %s730_s9 = sphi %s760_s9, %s1006_s9   ;;  %s726_s8 = sphi %s758_s8, %s1005_s8   ;;  %s722_s7 = sphi %s756_s7, %s1004_s7   ;;  %s718_s6 = sphi %s754_s6, %s1003_s6  }
   0x6   : > { %s779_s12 = sadd.s32 1, %s730_s9   ;;  %s24_s13 = sadd.s32 1, %s726_s8 }
   0x7   : > { %s21_s14 = ssub.s32 %s730_s9, %s779_s12  ;;  %p31_p0 = scmp.ne.s32.totalorder %s726_s8, %s722_s7 }
   0x8   : > { %p22_p1 = scmp.eq.s32.totalorder %s21_s14, 0  ;;  %p32_p2 = scmp.eq.s32.totalorder %s730_s9, 0 }
   0x9   : > { %p37_p3 = scmp.ne.s32.totalorder %s722_s7, %s718_s6  ;;  %p38_p4 = scmp.eq.s32.totalorder %s775_s10, 0 }
   0xa   : > { %s791_s15 = scalar_select %p22_p1, %s726_s8, %s24_s13  }
   0xb   : > { %p793_p5 = por %p32_p2, %p31_p0  ;;  %p797_p6 = por %p38_p4, %p37_p3 }
   0xc   : > { %p61_p7 = scmp.eq.s32.totalorder %s775_s10, 1  ;;  %p67_p8 = scmp.eq.s32.totalorder %s562_s11, 1 }
   0xd   : > { %p590_p10 = scmp.lt.s32.totalorder %s730_s9, 2  ;;  %s87_s20 = sand.u32 1, %s726_s8  }
   0xe   : > { %p804_p11 = por %p61_p7, %p31_p0  ;;  %p808_p12 = por %p67_p8, %p37_p3 }
   0xf   : > { %s576_s21 = sshll.u32 %s730_s9, 10  ;;  %s565_s22 = sshll.u32 %s87_s20, 6 }
  0x10   : > { %s997_s18 = scalar_select %p804_p11, 1, 0 }
  0x11   : > { %s998_s19 = scalar_select %p808_p12, 1, 0 }
  0x12   : > { %s817_s25 = scalar_lea.hbm %s992_s0, %s576_s21  ;;  %s91_s26 = scalar_lea.vmem [#allocation3], %s565_s22 }
  0x13   : > { %s98_s27 = sshll.u32 %s91_s26, 4  ;;  %p821_p13 = pnand %p590_p10, %p793_p5  ;;  %s825_s27 = int_to_ptr.vmem [resolvable:$true] %s98_s27 }
  0x14   : > { %s827_s29 = scalar_lea.sflag [#allocation4], %s87_s20  ;;  %s634_s30 = scalar_lea.hbm %s817_s25, 1024 }
  0x15   : > { %p635_p0 = scmp.ne.s32.totalorder %s817_s25, %s634_s30  ;;  %p636_p1 = pneg %p821_p13 }
  0x16   : > { %s639_s4 = scalar_lea.hbm %s992_s0, 2048  ;;  %p640_p4 = scmp.lt.u32.totalorder %s817_s25, %s992_s0 }
  0x17   : > { %p637_p2 = pnand %p636_p1, %p635_p0  ;;  %p641_p5 = scmp.lt.u32.totalorder %s639_s4, %s634_s30 }
  0x18   : > { %p643_p8 = scmp.lt.u32.totalorder %s634_s30, %s817_s25 }
  0x19   : > { %p638_p3 = pneg %p637_p2  ;;  %p642_p7 = por %p641_p5, %p640_p4 }
  0x1b   : > { %p644_p10 = por %p643_p8, %p642_p7 }
  0x1d   : > { %p645_p9 = pnand %p644_p10, %p638_p3 }
  0x1f   : > { %648 = shalt.err (!%p645_p9)
}
  0x20   : > { %s649_s13 = scalar_lea.vmem %s825_s27, 1024  ;;  %s732_s14 = smov [#allocation3]  }
  0x21   : > { %p650_p0 = scmp.ne.s32.totalorder %s825_s27, %s649_s13  ;;  %s654_s16 = sshll.u32 %s732_s14, 4  ;;  %s655_s16 = int_to_ptr.vmem [resolvable:$false] %s654_s16 }
  0x22   : > { %s656_s20 = scalar_lea.vmem %s655_s16, 2048  ;;  %p657_p11 = scmp.lt.s32.totalorder %s825_s27, %s655_s16 }
  0x23   : > { %p652_p2 = pnand %p650_p0, %p636_p1  ;;  %p658_p4 = scmp.lt.s32.totalorder %s656_s20, %s649_s13 }
  0x25   : > { %p653_p12 = pneg %p652_p2  ;;  %p659_p5 = por %p658_p4, %p657_p11 }
  0x27   : > { %p660_p7 = pnand %p659_p5, %p653_p12 }
  0x29   : > { %663 = shalt.err (!%p660_p7)
}
  0x2a   : > { %s733_s21 = smov 128   ;;  %s734_s22 = smov 8  }
  0x2b   : > { %585 = dma.hbm_to_vmem [thread:$0]  (!%p821_p13), %s817_s25, 1024, %s825_s27, %s827_s29, %s733_s21, %s733_s21, %s734_s22  }
  0x2c   : > { %p568_p9 = scmp.ge.s32.totalorder %s730_s9, 1  ;;  %p106_p1 = scmp.lt.s32.totalorder %s730_s9, 3 }
  0x2e   : > { %p107_p3 = pnand %p568_p9, %p106_p1 }
  0x2f   : > { %s858_s23 = sand.u32 (!%p107_p3), 1, %s722_s7  }
  0x30   : > { %110 = sbr.rel (%p107_p3) target bundleno = 565 (0x235), region = 24  ;;  %s569_s24 = sshll.u32 (!%p107_p3), %s858_s23, 6 }
  0x31   : > { %s113_s26 = scalar_lea.sflag (!%p107_p3), [#allocation4], %s858_s23  ;;  %s116_s30 = scalar_lea.vmem (!%p107_p3), [#allocation3], %s569_s24 }
  0x37   : > { %709 = dma.done.wait (%p797_p6), %s113_s26, 1024  }
  0x38   : > { %711 = vsyncadd (%p797_p6), %s113_s26, 4294966272  ;;  %v735_v0 = vmov 0.0   ;;  %v135_v1 = vld [vmem:[%s116_s30] sm:$0xff]  ;;  %v137_v2 = vld [vmem:[%s116_s30 + $0x10] sm:$0xff]  ;;  %s736_s17 = smov 2   ;;  %vm175_vm0 = vcmask 146448  }
  0x39   : > { %202 = vst [vmem:[#allocation2] sm:$0x3] %v735_v0  ;;  %203 = vst [vmem:[#allocation2 + $0x18] sm:$0x3] %v735_v0  ;;  %151 = vrot.lane.b32.xlu0 %v135_v1, %s736_s17  ;;  %155 = vrot.lane.b32.xlu1 %v137_v2, %s736_s17  ;;  %v136_v3 = vld [vmem:[%s116_s30 + $0x8] sm:$0xff]  ;;  %v138_v4 = vld [vmem:[%s116_s30 + $0x18] sm:$0xff] }
  0x3a   : > { %204 = vst [vmem:[#allocation2 + $0x30] sm:$0x3] %v735_v0  ;;  %205 = vst [vmem:[#allocation2 + $0x48] sm:$0x3] %v735_v0  ;;  %v140_v5 = vld [vmem:[%s116_s30 + $0x28] sm:$0xff]  ;;  %v139_v6 = vld [vmem:[%s116_s30 + $0x20] sm:$0xff] }
  0x3b   : > { %206 = vst [vmem:[#allocation2 + $0x12] sm:$0x3] %v735_v0  ;;  %207 = vst [vmem:[#allocation2 + $0x2a] sm:$0x3] %v735_v0  ;;  %v142_v7 = vld [vmem:[%s116_s30 + $0x38] sm:$0xff]  ;;  %v141_v8 = vld [vmem:[%s116_s30 + $0x30] sm:$0xff] }
  0x3c   : > { %208 = vst [vmem:[#allocation2 + $0x42] sm:$0x3] %v735_v0  ;;  %209 = vst [vmem:[#allocation2 + $0x5a] sm:$0x3] %v735_v0  ;;  %vm184_vm1 = vcmask 15360   ;;  %vm193_vm2 = vcmask 162960  }
  0x3d   : > { %153 = vrot.lane.b32.xlu0 %v136_v3, %s736_s17  ;;  %157 = vrot.lane.b32.xlu1 %v138_v4, %s736_s17  ;;  %s737_s25 = smov 4   ;;  %s738_s27 = smov 1   ;;  %vm466_vm3 = vcmask 130048  }
  0x3e   : > { %s739_s28 = smov 127   ;;  %s740_s29 = smov 125  }
  0x3f   : > { %s134_s2 = scalar_lea.vmem [#allocation6], %s569_s24  ;;  %s577_s4 = sshll.u32 %s775_s10, 10 }
  0x40   : > { %s489_s3 = sshll.u32 %s134_s2, 4  ;;  %s946_s13 = scalar_lea.hbm %s993_s1, %s577_s4  ;;  %s939_s3 = int_to_ptr.vmem [resolvable:$true] %s489_s3 }
  0x41   : > { %161 = vrot.lane.b32.xlu1 %v140_v5, %s736_s17  ;;  %159 = vrot.lane.b32.xlu0 %v139_v6, %s736_s17  ;;  %s476_s10 = scalar_lea.sflag [#allocation5], %s858_s23  ;;  %s664_s14 = scalar_lea.vmem %s939_s3, 1024 }
  0x42   : > { %p665_p6 = scmp.ne.s32.totalorder %s939_s3, %s664_s14  ;;  %p1000_p11 = scmp.ne.s32.totalorder %s997_s18, 0 }
  0x43   : > { %s741_s16 = smov [#allocation6]  }
  0x44   : > { %p666_p12 = pnand %p665_p6, %p1000_p11  ;;  %s668_s20 = sshll.u32 %s741_s16, 4  ;;  %s669_s20 = int_to_ptr.vmem [resolvable:$false] %s668_s20 }
  0x45   : > { %165 = vrot.lane.b32.xlu1 %v142_v7, %s736_s17  ;;  %163 = vrot.lane.b32.xlu0 %v141_v8, %s736_s17  ;;  %s670_s21 = scalar_lea.vmem %s669_s20, 2048  ;;  %p671_p8 = scmp.lt.s32.totalorder %s939_s3, %s669_s20 }
  0x46   : > { %p667_p13 = pneg %p666_p12  ;;  %p672_p10 = scmp.lt.s32.totalorder %s670_s21, %s664_s14 }
  0x48   : > { %p673_p0 = por %p672_p10, %p671_p8 }
  0x4a   : > { %p674_p2 = pnand %p673_p0, %p667_p13 }
  0xab   : > { %v152_v9 = vpop.permute.xlu0 %151  ;;  %v156_v10 = vpop.permute.xlu1 %155 }
  0xac   : > { %176 = vst.msk [vmem:[#allocation2 + $0x2] sm:$0xff] %vm175_vm0, %v152_v9  ;;  %178 = vst.msk [vmem:[#allocation2 + $0x1a] sm:$0xff] %vm175_vm0, %v156_v10 }
  0xad   : > { %185 = vst.msk [vmem:[#allocation2 + $0x2] sm:$0xff] %vm184_vm1, %v735_v0  ;;  %187 = vst.msk [vmem:[#allocation2 + $0x1a] sm:$0xff] %vm184_vm1, %v735_v0 }
  0xae   : > { %194 = vst.msk [vmem:[#allocation2 + $0x2] sm:$0xff] %vm193_vm2, %v735_v0  ;;  %196 = vst.msk [vmem:[#allocation2 + $0x1a] sm:$0xff] %vm193_vm2, %v735_v0 }
  0xaf   : > { %v154_v11 = vpop.permute.xlu0 %153  ;;  %v158_v12 = vpop.permute.xlu1 %157 }
  0xb0   : > { %177 = vst.msk [vmem:[#allocation2 + $0xa] sm:$0xff] %vm175_vm0, %v154_v11  ;;  %179 = vst.msk [vmem:[#allocation2 + $0x22] sm:$0xff] %vm175_vm0, %v158_v12 }
  0xb1   : > { %186 = vst.msk [vmem:[#allocation2 + $0xa] sm:$0xff] %vm184_vm1, %v735_v0  ;;  %188 = vst.msk [vmem:[#allocation2 + $0x22] sm:$0xff] %vm184_vm1, %v735_v0 }
  0xb2   : > { %195 = vst.msk [vmem:[#allocation2 + $0xa] sm:$0xff] %vm193_vm2, %v735_v0  ;;  %197 = vst.msk [vmem:[#allocation2 + $0x22] sm:$0xff] %vm193_vm2, %v735_v0 }
  0xb3   : > { %v162_v13 = vpop.permute.xlu1 %161  ;;  %v160_v14 = vpop.permute.xlu0 %159 }
  0xb4   : > { %181 = vst.msk [vmem:[#allocation2 + $0x3a] sm:$0xff] %vm175_vm0, %v162_v13  ;;  %180 = vst.msk [vmem:[#allocation2 + $0x32] sm:$0xff] %vm175_vm0, %v160_v14 }
  0xb5   : > { %190 = vst.msk [vmem:[#allocation2 + $0x3a] sm:$0xff] %vm184_vm1, %v735_v0  ;;  %189 = vst.msk [vmem:[#allocation2 + $0x32] sm:$0xff] %vm184_vm1, %v735_v0  ;;  %v226_v34 = vld [vmem:[#allocation2 + $0x2] sm:$0xff]  ;;  %v228_v38 = vld [vmem:[#allocation2 + $0x1a] sm:$0xff] }
  0xb6   : > { %199 = vst.msk [vmem:[#allocation2 + $0x3a] sm:$0xff] %vm193_vm2, %v735_v0  ;;  %198 = vst.msk [vmem:[#allocation2 + $0x32] sm:$0xff] %vm193_vm2, %v735_v0  ;;  %v234_v36 = vmul.f32 0.2, %v226_v34  ;;  %v236_v40 = vmul.f32 0.2, %v228_v38 }
  0xb7   : > { %v166_v15 = vpop.permute.xlu1 %165  ;;  %v164_v16 = vpop.permute.xlu0 %163  ;;  %v210_v58 = vld [vmem:[#allocation2 + $0x1] sm:$0xff]  ;;  %v212_v62 = vld [vmem:[#allocation2 + $0x19] sm:$0xff] }
  0xb8   : > { %183 = vst.msk [vmem:[#allocation2 + $0x52] sm:$0xff] %vm175_vm0, %v166_v15  ;;  %182 = vst.msk [vmem:[#allocation2 + $0x4a] sm:$0xff] %vm175_vm0, %v164_v16  ;;  %v338_v60 = vmul.f32 0.1, %v210_v58  ;;  %v340_v4 = vmul.f32 0.1, %v212_v62 }
  0xb9   : > { %192 = vst.msk [vmem:[#allocation2 + $0x52] sm:$0xff] %vm184_vm1, %v735_v0  ;;  %191 = vst.msk [vmem:[#allocation2 + $0x4a] sm:$0xff] %vm184_vm1, %v735_v0  ;;  %v283_v17 = vld [vmem:[#allocation2 + $0xb] sm:$0xff]  ;;  %v282_v18 = vld [vmem:[#allocation2 + $0x3] sm:$0xff] }
  0xba   : > { %v285_v19 = vld [vmem:[#allocation2 + $0x23] sm:$0xff]  ;;  %201 = vst.msk [vmem:[#allocation2 + $0x52] sm:$0xff] %vm193_vm2, %v735_v0  ;;  %200 = vst.msk [vmem:[#allocation2 + $0x4a] sm:$0xff] %vm193_vm2, %v735_v0  ;;  %v347_v20 = vmul.f32 0.3, %v283_v17  ;;  %v284_v22 = vld [vmem:[#allocation2 + $0x1b] sm:$0xff] }
  0xbb   : > { %v346_v21 = vmul.f32 0.3, %v282_v18  ;;  %v349_v23 = vmul.f32 0.3, %v285_v19  ;;  %v348_v24 = vmul.f32 0.3, %v284_v22 }
  0xbc   : > { %364 = vrot.lane.b32.xlu1 %v347_v20, %s737_s25  ;;  %v227_v33 = vld [vmem:[#allocation2 + $0xa] sm:$0xff]  ;;  %v229_v37 = vld [vmem:[#allocation2 + $0x22] sm:$0xff]  ;;  %v291_v49 = vmul.f32 0.25, %v283_v17  ;;  %v290_v50 = vmul.f32 0.25, %v282_v18  ;;  %v293_v51 = vmul.f32 0.25, %v285_v19  ;;  %v292_v52 = vmul.f32 0.25, %v284_v22 }
  0xbd   : > { %362 = vrot.lane.b32.xlu0 %v346_v21, %s737_s25  ;;  %v287_v25 = vld [vmem:[#allocation2 + $0x3b] sm:$0xff]  ;;  %v286_v26 = vld [vmem:[#allocation2 + $0x33] sm:$0xff]  ;;  %v235_v35 = vmul.f32 0.2, %v227_v33  ;;  %v237_v39 = vmul.f32 0.2, %v229_v37 }
  0xbe   : > { %v351_v27 = vmul.f32 0.3, %v287_v25  ;;  %v350_v28 = vmul.f32 0.3, %v286_v26  ;;  %v231_v41 = vld [vmem:[#allocation2 + $0x3a] sm:$0xff]  ;;  %v230_v42 = vld [vmem:[#allocation2 + $0x32] sm:$0xff] }
  0xbf   : > { %v239_v43 = vmul.f32 0.2, %v231_v41  ;;  %v238_v44 = vmul.f32 0.2, %v230_v42  ;;  %v295_v53 = vmul.f32 0.25, %v287_v25  ;;  %v294_v54 = vmul.f32 0.25, %v286_v26 }
  0xc0   : > { %368 = vrot.lane.b32.xlu1 %v349_v23, %s737_s25  ;;  %v211_v57 = vld [vmem:[#allocation2 + $0x9] sm:$0xff]  ;;  %v213_v61 = vld [vmem:[#allocation2 + $0x21] sm:$0xff]  ;;  %v215_v5 = vld [vmem:[#allocation2 + $0x39] sm:$0xff] }
  0xc1   : > { %366 = vrot.lane.b32.xlu0 %v348_v24, %s737_s25  ;;  %v289_v29 = vld [vmem:[#allocation2 + $0x53] sm:$0xff]  ;;  %v288_v30 = vld [vmem:[#allocation2 + $0x4b] sm:$0xff]  ;;  %v339_v59 = vmul.f32 0.1, %v211_v57  ;;  %v341_v3 = vmul.f32 0.1, %v213_v61 }
  0xc2   : > { %v353_v31 = vmul.f32 0.3, %v289_v29  ;;  %v352_v32 = vmul.f32 0.3, %v288_v30  ;;  %v233_v45 = vld [vmem:[#allocation2 + $0x52] sm:$0xff]  ;;  %v232_v46 = vld [vmem:[#allocation2 + $0x4a] sm:$0xff] }
  0xc3   : > { %v241_v47 = vmul.f32 0.2, %v233_v45  ;;  %v240_v48 = vmul.f32 0.2, %v232_v46  ;;  %v297_v55 = vmul.f32 0.25, %v289_v29  ;;  %v296_v56 = vmul.f32 0.25, %v288_v30 }
  0xc4   : > { %372 = vrot.lane.b32.xlu1 %v351_v27, %s737_s25  ;;  %v214_v6 = vld [vmem:[#allocation2 + $0x31] sm:$0xff]  ;;  %v343_v11 = vmul.f32 0.1, %v215_v5  ;;  %v216_v14 = vld [vmem:[#allocation2 + $0x49] sm:$0xff] }
  0xc5   : > { %370 = vrot.lane.b32.xlu0 %v350_v28, %s737_s25  ;;  %v342_v12 = vmul.f32 0.1, %v214_v6  ;;  %v217_v13 = vld [vmem:[#allocation2 + $0x51] sm:$0xff]  ;;  %v344_v20 = vmul.f32 0.1, %v216_v14 }
  0xc6   : > { %v345_v19 = vmul.f32 0.1, %v217_v13 }
  0xc8   : > { %376 = vrot.lane.b32.xlu1 %v353_v31, %s737_s25 }
  0xc9   : > { %374 = vrot.lane.b32.xlu0 %v352_v32, %s737_s25 }
  0xcc   : > { %252 = vrot.lane.b32.xlu1 %v235_v35, %s738_s27 }
  0xcd   : > { %250 = vrot.lane.b32.xlu0 %v234_v36, %s738_s27 }
  0xd0   : > { %256 = vrot.lane.b32.xlu1 %v237_v39, %s738_s27  ;;  %v219_v39 = vmul.f32 0.15, %v211_v57 }
  0xd1   : > { %254 = vrot.lane.b32.xlu0 %v236_v40, %s738_s27  ;;  %v218_v40 = vmul.f32 0.15, %v210_v58  ;;  %v224_v58 = vmul.f32 0.15, %v216_v14 }
  0xd4   : > { %260 = vrot.lane.b32.xlu1 %v239_v43, %s738_s27  ;;  %v221_v43 = vmul.f32 0.15, %v213_v61 }
  0xd5   : > { %258 = vrot.lane.b32.xlu0 %v238_v44, %s738_s27  ;;  %v220_v44 = vmul.f32 0.15, %v212_v62 }
  0xd8   : > { %264 = vrot.lane.b32.xlu1 %v241_v47, %s738_s27  ;;  %v223_v47 = vmul.f32 0.15, %v215_v5 }
  0xd9   : > { %262 = vrot.lane.b32.xlu0 %v240_v48, %s738_s27  ;;  %v222_v48 = vmul.f32 0.15, %v214_v6 }
  0xdc   : > { %308 = vrot.lane.b32.xlu1 %v291_v49, %s736_s17 }
  0xdd   : > { %306 = vrot.lane.b32.xlu0 %v290_v50, %s736_s17 }
  0xe0   : > { %312 = vrot.lane.b32.xlu1 %v293_v51, %s736_s17 }
  0xe1   : > { %310 = vrot.lane.b32.xlu0 %v292_v52, %s736_s17 }
  0xe4   : > { %316 = vrot.lane.b32.xlu1 %v295_v53, %s736_s17 }
  0xe5   : > { %314 = vrot.lane.b32.xlu0 %v294_v54, %s736_s17 }
  0xe8   : > { %320 = vrot.lane.b32.xlu1 %v297_v55, %s736_s17 }
  0xe9   : > { %318 = vrot.lane.b32.xlu0 %v296_v56, %s736_s17 }
 0x12e   : > { %v365_v63 = vpop.permute.xlu1 %364 }
 0x12f   : > { %v363_v0 = vpop.permute.xlu0 %362  ;;  %v387_v1 = vadd.f32 %v365_v63, %v339_v59 }
 0x130   : > { %v386_v2 = vadd.f32 %v363_v0, %v338_v60  ;;  %v225_v60 = vmul.f32 0.15, %v217_v13 }
 0x131   : > { %404 = vrot.lane.b32.xlu1 %v387_v1, %s739_s28 }
 0x132   : > { %402 = vrot.lane.b32.xlu0 %v386_v2, %s739_s28  ;;  %v369_v7 = vpop.permute.xlu1 %368 }
 0x133   : > { %v367_v8 = vpop.permute.xlu0 %366  ;;  %v389_v9 = vadd.f32 %v369_v7, %v341_v3 }
 0x134   : > { %v388_v10 = vadd.f32 %v367_v8, %v340_v4 }
 0x135   : > { %408 = vrot.lane.b32.xlu1 %v389_v9, %s739_s28 }
 0x136   : > { %406 = vrot.lane.b32.xlu0 %v388_v10, %s739_s28  ;;  %v373_v15 = vpop.permute.xlu1 %372 }
 0x137   : > { %v371_v16 = vpop.permute.xlu0 %370  ;;  %v391_v17 = vadd.f32 %v373_v15, %v343_v11 }
 0x138   : > { %v390_v18 = vadd.f32 %v371_v16, %v342_v12 }
 0x139   : > { %412 = vrot.lane.b32.xlu1 %v391_v17, %s739_s28 }
 0x13a   : > { %410 = vrot.lane.b32.xlu0 %v390_v18, %s739_s28  ;;  %v377_v21 = vpop.permute.xlu1 %376 }
 0x13b   : > { %v375_v22 = vpop.permute.xlu0 %374  ;;  %v393_v23 = vadd.f32 %v377_v21, %v345_v19 }
 0x13c   : > { %v392_v24 = vadd.f32 %v375_v22, %v344_v20 }
 0x13d   : > { %416 = vrot.lane.b32.xlu1 %v393_v23, %s739_s28 }
 0x13e   : > { %414 = vrot.lane.b32.xlu0 %v392_v24, %s739_s28  ;;  %v253_v25 = vpop.permute.xlu1 %252 }
 0x13f   : > { %v251_v26 = vpop.permute.xlu0 %250  ;;  %v275_v41 = vadd.f32 %v253_v25, %v219_v39 }
 0x140   : > { %v274_v42 = vadd.f32 %v251_v26, %v218_v40 }
 0x142   : > { %v257_v27 = vpop.permute.xlu1 %256 }
 0x143   : > { %v255_v28 = vpop.permute.xlu0 %254  ;;  %v277_v49 = vadd.f32 %v257_v27, %v221_v43 }
 0x144   : > { %v276_v50 = vadd.f32 %v255_v28, %v220_v44 }
 0x146   : > { %v261_v29 = vpop.permute.xlu1 %260 }
 0x147   : > { %v259_v30 = vpop.permute.xlu0 %258  ;;  %v279_v59 = vadd.f32 %v261_v29, %v223_v47 }
 0x148   : > { %v278_v57 = vadd.f32 %v259_v30, %v222_v48 }
 0x14a   : > { %v265_v31 = vpop.permute.xlu1 %264 }
 0x14b   : > { %v263_v32 = vpop.permute.xlu0 %262  ;;  %v281_v3 = vadd.f32 %v265_v31, %v225_v60 }
 0x14c   : > { %v280_v4 = vadd.f32 %v263_v32, %v224_v58 }
 0x14e   : > { %v309_v33 = vpop.permute.xlu1 %308 }
 0x14f   : > { %v307_v34 = vpop.permute.xlu0 %306  ;;  %v331_v51 = vadd.f32 %v309_v33, %v275_v41 }
 0x150   : > { %v330_v52 = vadd.f32 %v307_v34, %v274_v42 }
 0x152   : > { %v313_v35 = vpop.permute.xlu1 %312 }
 0x153   : > { %v311_v36 = vpop.permute.xlu0 %310  ;;  %v333_v63 = vadd.f32 %v313_v35, %v277_v49 }
 0x154   : > { %v332_v0 = vadd.f32 %v311_v36, %v276_v50 }
 0x156   : > { %v317_v37 = vpop.permute.xlu1 %316 }
 0x157   : > { %v315_v38 = vpop.permute.xlu0 %314  ;;  %v335_v5 = vadd.f32 %v317_v37, %v279_v59 }
 0x158   : > { %v334_v6 = vadd.f32 %v315_v38, %v278_v57 }
 0x15a   : > { %v321_v45 = vpop.permute.xlu1 %320 }
 0x15b   : > { %v319_v46 = vpop.permute.xlu0 %318  ;;  %v337_v11 = vadd.f32 %v321_v45, %v281_v3 }
 0x15c   : > { %v336_v12 = vadd.f32 %v319_v46, %v280_v4 }
 0x1a3   : > { %v405_v53 = vpop.permute.xlu1 %404 }
 0x1a4   : > { %v403_v54 = vpop.permute.xlu0 %402  ;;  %v427_v55 = vadd.f32 %v405_v53, %v331_v51 }
 0x1a5   : > { %v426_v56 = vadd.f32 %v403_v54, %v330_v52 }
 0x1a6   : > { %444 = vrot.lane.b32.xlu1 %v427_v55, %s740_s29 }
 0x1a7   : > { %442 = vrot.lane.b32.xlu0 %v426_v56, %s740_s29  ;;  %v409_v61 = vpop.permute.xlu1 %408 }
 0x1a8   : > { %v407_v62 = vpop.permute.xlu0 %406  ;;  %v429_v1 = vadd.f32 %v409_v61, %v333_v63 }
 0x1a9   : > { %v428_v2 = vadd.f32 %v407_v62, %v332_v0 }
 0x1aa   : > { %448 = vrot.lane.b32.xlu1 %v429_v1, %s740_s29 }
 0x1ab   : > { %446 = vrot.lane.b32.xlu0 %v428_v2, %s740_s29  ;;  %v413_v7 = vpop.permute.xlu1 %412 }
 0x1ac   : > { %v411_v8 = vpop.permute.xlu0 %410  ;;  %v431_v9 = vadd.f32 %v413_v7, %v335_v5 }
 0x1ad   : > { %v430_v10 = vadd.f32 %v411_v8, %v334_v6 }
 0x1ae   : > { %452 = vrot.lane.b32.xlu1 %v431_v9, %s740_s29 }
 0x1af   : > { %450 = vrot.lane.b32.xlu0 %v430_v10, %s740_s29  ;;  %v417_v13 = vpop.permute.xlu1 %416 }
 0x1b0   : > { %v415_v14 = vpop.permute.xlu0 %414  ;;  %v433_v15 = vadd.f32 %v417_v13, %v337_v11 }
 0x1b1   : > { %v432_v16 = vadd.f32 %v415_v14, %v336_v12 }
 0x1b2   : > { %456 = vrot.lane.b32.xlu1 %v433_v15, %s740_s29 }
 0x1b3   : > { %454 = vrot.lane.b32.xlu0 %v432_v16, %s740_s29 }
 0x218   : > { %v445_v17 = vpop.permute.xlu1 %444 }
 0x219   : > { %v443_v18 = vpop.permute.xlu0 %442  ;;  %468 = vst.msk [vmem:[%s134_s2 + $0x8] sm:$0xff] %vm466_vm3, %v445_v17 }
 0x21a   : > { %467 = vst.msk [vmem:[%s134_s2] sm:$0xff] %vm466_vm3, %v443_v18 }
 0x21c   : > { %v449_v19 = vpop.permute.xlu1 %448 }
 0x21d   : > { %v447_v20 = vpop.permute.xlu0 %446  ;;  %470 = vst.msk [vmem:[%s134_s2 + $0x18] sm:$0xff] %vm466_vm3, %v449_v19 }
 0x21e   : > { %469 = vst.msk [vmem:[%s134_s2 + $0x10] sm:$0xff] %vm466_vm3, %v447_v20 }
 0x220   : > { %v453_v21 = vpop.permute.xlu1 %452 }
 0x221   : > { %v451_v22 = vpop.permute.xlu0 %450  ;;  %472 = vst.msk [vmem:[%s134_s2 + $0x28] sm:$0xff] %vm466_vm3, %v453_v21 }
 0x222   : > { %471 = vst.msk [vmem:[%s134_s2 + $0x20] sm:$0xff] %vm466_vm3, %v451_v22 }
 0x224   : > { %v457_v23 = vpop.permute.xlu1 %456 }
 0x225   : > { %v455_v24 = vpop.permute.xlu0 %454  ;;  %474 = vst.msk [vmem:[%s134_s2 + $0x38] sm:$0xff] %vm466_vm3, %v457_v23 }
 0x226   : > { %473 = vst.msk [vmem:[%s134_s2 + $0x30] sm:$0xff] %vm466_vm3, %v455_v24 }
 0x227   : > { %677 = shalt.err (!%p674_p2)
}
 0x228   : > { %s678_s22 = scalar_lea.hbm %s946_s13, 1024  ;;  %s682_s30 = scalar_lea.hbm %s993_s1, 2048 }
 0x229   : > { %p679_p4 = scmp.ne.s32.totalorder %s946_s13, %s678_s22  ;;  %p683_p9 = scmp.lt.u32.totalorder %s946_s13, %s993_s1 }
 0x22a   : > { %p684_p1 = scmp.lt.u32.totalorder %s682_s30, %s678_s22  ;;  %p686_p6 = scmp.lt.u32.totalorder %s678_s22, %s946_s13 }
 0x22b   : > { %p680_p5 = pnand %p679_p4, %p1000_p11 }
 0x22c   : > { %p685_p3 = por %p684_p1, %p683_p9 }
 0x22d   : > { %p681_p7 = pneg %p680_p5 }
 0x22e   : > { %p687_p12 = por %p686_p6, %p685_p3 }
 0x230   : > { %p688_p13 = pnand %p687_p12, %p681_p7 }
 0x232   : > { %691 = shalt.err (!%p688_p13)
}
 0x233   : > { %s742_s27 = smov 128   ;;  %s743_s28 = smov 8  }
 0x234   : > { %580 = dma.vmem_to_hbm [thread:$0]  (%p1000_p11), %s939_s3, 1024, %s946_s13, %s476_s10, %s742_s27, %s742_s27, %s743_s28  }
 0x235 PF: > { %s504_s29 = sand.u32 1, %s718_s6   ;;  %p1001_p8 = scmp.ne.s32.totalorder %s998_s19, 0 }
 0x236   : > { %p1002_p10 = scmp.ge.s32.totalorder %s730_s9, 2  ;;  %s505_s2 = scalar_lea.sflag [#allocation5], %s504_s29 }
 0x238   : > { %p587_p0 = pnand %p1002_p10, %p1001_p8 }
 0x23a   : > { %713 = dma.done.wait (!%p587_p0), %s505_s2, 1024  }
 0x23b   : > { %715 = vsyncadd (!%p587_p0), %s505_s2, 4294966272  ;;  %p14_p2 = scmp.ge.s32.totalorder %s779_s12, 4   ;;  %s1003_s6 = smov %s722_s7 }
 0x23c   : > { %s1004_s7 = smov %s726_s8  ;;  %s1005_s8 = smov %s791_s15 }
 0x23d   : > { %s1006_s9 = smov %s779_s12  ;;  %16 = sbr.rel (!%p14_p2) target bundleno = 5 (0x5), region = 69 }
 0x244   :  { %510 = vsyncpa [#allocation4], 1 }
 0x245   :  { %512 = vsyncpa [#allocation4 + $0x1], 1 }
 0x246   :  { %513 = vsyncpa [#allocation5], 1 }
 0x247   :  { %515 = vsyncpa [#allocation5 + $0x1], 1 }

</bundles_post_ra>
